<compile_context>
chip_gen: v6e
topology: v6e:2x2x1
jax: 0.10.0
libtpu: 0.0.40
codegen_flags: <defaults>
</compile_context>

<pallas_src>
import functools

import jax
import jax.numpy as jnp
from jax.experimental import pallas as pl
from jax.experimental.pallas import tpu as pltpu

# ------------------------- model hyper-params -------------------------
DIM = 32          # C
NUM_HEADS = 4     # H
HEAD_DIM = DIM // NUM_HEADS
LORA_RANK = 8
LORA_ALPHA = 1.0
LORA_SCALING = LORA_ALPHA / LORA_RANK
SCALE = HEAD_DIM ** (-0.5)


# ------------------------- fused kernel -------------------------
def fused_attention_kernel(x_ref, wqkv_ref, wproj_ref, bproj_ref, o_ref,
                           *, batch, seq_len):
    """Fused qkv (LoRA pre-folded) -> multi-head attention -> output proj.

    Everything lives in VMEM for the single grid step:
      x:     (B*N, C)
      wqkv:  (C, 3C)   effective qkv weight (LoRA folded), pre-transposed
      wproj: (C, C)    output projection weight, pre-transposed
      bproj: (1, C)
      out:   (B*N, C)  merged-head, lane-dense store
    """
    C = DIM
    Dh = HEAD_DIM

    x = x_ref[...]
    # qkv = x @ W_eff -> (B*N, 3C). Column layout is (3, H, Dh) fastest-last,
    # matching torch's reshape(B, N, 3, H, Dh).
    qkv = jnp.dot(x, wqkv_ref[...], preferred_element_type=jnp.float32)

    # Attention for every (batch, head) pair inside this one invocation.
    # B*H is tiny and static, so this is a fully unrolled chain of small
    # in-VMEM matmuls -- no grid-step / DMA overhead between them.
    batch_rows = []
    for b in range(batch):
        r0 = b * seq_len
        head_outs = []
        for h in range(NUM_HEADS):
            c0 = h * Dh
            q = qkv[r0:r0 + seq_len, c0:c0 + Dh] * SCALE            # (N, Dh)
            k = qkv[r0:r0 + seq_len, C + c0:C + c0 + Dh]            # (N, Dh)
            v = qkv[r0:r0 + seq_len, 2 * C + c0:2 * C + c0 + Dh]    # (N, Dh)

            s = jnp.einsum('nd,md->nm', q, k,
                           preferred_element_type=jnp.float32)      # (N, N)
            s = s - jnp.max(s, axis=-1, keepdims=True)
            p = jnp.exp(s)
            # exact reciprocal (approx=True would also work; keep exact to
            # stay well inside the 1e-4 reference tolerance)
            l_inv = pl.reciprocal(jnp.sum(p, axis=-1, keepdims=True))
            pv = jnp.dot(p, v, preferred_element_type=jnp.float32)  # (N, Dh)
            head_outs.append(pv * l_inv)
        batch_rows.append(jnp.concatenate(head_outs, axis=1))       # (N, C)
    attn = jnp.concatenate(batch_rows, axis=0)                      # (B*N, C)

    y = jnp.dot(attn, wproj_ref[...], preferred_element_type=jnp.float32)
    o_ref[...] = (y + bproj_ref[...]).astype(o_ref.dtype)


# ------------------------- wrapper -------------------------
def attention_forward(x, params):
    """x: (B, N, C) -> (B, N, C). Eval-mode forward of the Attention module."""
    B, N, C = x.shape
    assert C == DIM

    # Eval-mode LoRA fold (exact algebra on static weights, done once outside
    # the kernel):  x @ W + ((x @ A) @ B) * s  ==  x @ (W + s * A @ B)
    w_qkv_eff = params["w_qkv_t"] + LORA_SCALING * (
        params["lora_a_t"] @ params["lora_b_t"]
    )

    x2d = x.reshape(B * N, C)
    kernel = functools.partial(fused_attention_kernel, batch=B, seq_len=N)

    def full(shape):
        # single-program grid: whole array as one VMEM block
        return pl.BlockSpec(shape, lambda i: tuple(0 for _ in shape))

    y2d = pl.pallas_call(
        kernel,
        out_shape=jax.ShapeDtypeStruct((B * N, C), x.dtype),
        grid=(1,),
        in_specs=[
            full((B * N, C)),
            full((C, 3 * C)),
            full((C, C)),
            full((1, C)),
        ],
        out_specs=full((B * N, C)),
        compiler_params=pltpu.CompilerParams(
            dimension_semantics=("arbitrary",)),
    )(x2d, w_qkv_eff, params["w_proj_t"], params["b_proj"])

    return y2d.reshape(B, N, C)


# ------------------------- pure-JAX reference -------------------------
def attention_reference(x, params):
    B, N, C = x.shape
    qkv = x @ params["w_qkv_t"] + (
        (x @ params["lora_a_t"]) @ params["lora_b_t"]
    ) * LORA_SCALING
    qkv = qkv.reshape(B, N, 3, NUM_HEADS, HEAD_DIM).transpose(2, 0, 3, 1, 4)
    q, k, v = qkv[0], qkv[1], qkv[2]
    attn = jax.nn.softmax((q * SCALE) @ jnp.swapaxes(k, -2, -1), axis=-1)
    o = (attn @ v).transpose(0, 2, 1, 3).reshape(B, N, C)
    return o @ params["w_proj_t"] + params["b_proj"][0]


# ------------------------- main -------------------------
if __name__ == "__main__":
    key = jax.random.PRNGKey(0)
    k_x, k_wqkv, k_la, k_lb, k_wp, k_bp = jax.random.split(key, 6)

    B, N, C = 2, 8, DIM
    x = jax.random.normal(k_x, (B, N, C), dtype=jnp.float32)

    params = {
        # stored pre-transposed: (in_features, out_features)
        "w_qkv_t": jax.random.normal(k_wqkv, (C, 3 * C), jnp.float32) * 0.05,
        "lora_a_t": jax.random.normal(k_la, (C, LORA_RANK), jnp.float32) * 0.05,
        # loralib inits lora_B to zeros; use nonzero here to exercise the path
        "lora_b_t": jax.random.normal(k_lb, (LORA_RANK, 3 * C), jnp.float32) * 0.05,
        "w_proj_t": jax.random.normal(k_wp, (C, C), jnp.float32) * 0.05,
        "b_proj": jax.random.normal(k_bp, (1, C), jnp.float32) * 0.05,
    }

    y = attention_forward(x, params)
    y = jax.block_until_ready(y)

    y_ref = attention_reference(x, params)
    assert y.shape == (B, N, C)
    assert jnp.allclose(y, y_ref, atol=1e-4, rtol=1e-4), "mismatch vs reference"

    print("KERNEL_OK")
</pallas_src>

<mosaic_0001>
module attributes {stable_mosaic.version = 11 : i64} {
  func.func @fused_attention_kernel(%arg0: i32, %arg1: memref<16x32xf32, #tpu.memory_space<vmem>>, %arg2: memref<32x96xf32, #tpu.memory_space<vmem>>, %arg3: memref<32x32xf32, #tpu.memory_space<vmem>>, %arg4: memref<1x32xf32, #tpu.memory_space<vmem>>, %arg5: memref<16x32xf32, #tpu.memory_space<vmem>>) attributes {dimension_semantics = [#tpu.dimension_semantics<arbitrary>], iteration_bounds = array<i64: 1>, scalar_prefetch = 0 : i64, scratch_operands = 0 : i64, tpu.core_type = #tpu.core_type<tc>, window_params = [{pipeline_mode = #tpu.pipeline_mode<synchronous>, transform_indices = @transform_0, window_bounds = array<i64: 16, 32>}, {pipeline_mode = #tpu.pipeline_mode<synchronous>, transform_indices = @transform_1, window_bounds = array<i64: 32, 96>}, {pipeline_mode = #tpu.pipeline_mode<synchronous>, transform_indices = @transform_2, window_bounds = array<i64: 32, 32>}, {pipeline_mode = #tpu.pipeline_mode<synchronous>, transform_indices = @transform_3, window_bounds = array<i64: 1, 32>}, {pipeline_mode = #tpu.pipeline_mode<synchronous>, transform_indices = @transform_4, window_bounds = array<i64: 16, 32>}]} {
    %c0 = arith.constant 0 : index
    %c0_0 = arith.constant 0 : index
    %0 = vector.load %arg1[%c0, %c0_0] : memref<16x32xf32, #tpu.memory_space<vmem>>, vector<16x32xf32>
    %c0_1 = arith.constant 0 : index
    %c0_2 = arith.constant 0 : index
    %1 = vector.load %arg2[%c0_1, %c0_2] : memref<32x96xf32, #tpu.memory_space<vmem>>, vector<32x96xf32>
    %cst = arith.constant dense<0.000000e+00> : vector<16x96xf32>
    %2 = tpu.matmul %0, %1, %cst {dimension_numbers = #tpu.dot_dimension_numbers<[1], [0], [0], [1], [0, 0, 1, 1], [], []>} : vector<16x32xf32>, vector<32x96xf32>, vector<16x96xf32> -> vector<16x96xf32>
    %3 = vector.extract_strided_slice %2 {offsets = [0, 0], sizes = [8, 8], strides = [1, 1]} : vector<16x96xf32> to vector<8x8xf32>
    %cst_3 = arith.constant 0.353553385 : f32
    %4 = vector.broadcast %cst_3 : f32 to vector<8x8xf32>
    %5 = arith.mulf %3, %4 : vector<8x8xf32>
    %6 = vector.extract_strided_slice %2 {offsets = [0, 32], sizes = [8, 8], strides = [1, 1]} : vector<16x96xf32> to vector<8x8xf32>
    %7 = vector.extract_strided_slice %2 {offsets = [0, 64], sizes = [8, 8], strides = [1, 1]} : vector<16x96xf32> to vector<8x8xf32>
    "tpu.trace_start"() <{level = 10 : i32, message = "nd,md->nm"}> : () -> ()
    %cst_4 = arith.constant dense<0.000000e+00> : vector<8x8xf32>
    %8 = tpu.matmul %5, %6, %cst_4 {dimension_numbers = #tpu.dot_dimension_numbers<[1], [1], [0], [0], [0, 0, 1, 0], [], []>} : vector<8x8xf32>, vector<8x8xf32>, vector<8x8xf32> -> vector<8x8xf32>
    "tpu.trace_stop"() : () -> ()
    %cst_5 = arith.constant dense<0xFF800000> : vector<8xf32>
    %9 = vector.multi_reduction <maximumf>, %8, %cst_5 [1] : vector<8x8xf32> to vector<8xf32>
    %10 = vector.shape_cast %9 : vector<8xf32> to vector<8x1xf32>
    %11 = vector.broadcast %10 : vector<8x1xf32> to vector<8x8xf32>
    %12 = arith.subf %8, %11 : vector<8x8xf32>
    %13 = math.exp %12 : vector<8x8xf32>
    %cst_6 = arith.constant dense<0.000000e+00> : vector<8xf32>
    %14 = vector.multi_reduction <add>, %13, %cst_6 [1] : vector<8x8xf32> to vector<8xf32>
    %15 = vector.shape_cast %14 : vector<8xf32> to vector<8x1xf32>
    %16 = tpu.reciprocal %15 : vector<8x1xf32> -> vector<8x1xf32>
    %cst_7 = arith.constant dense<0.000000e+00> : vector<8x8xf32>
    %17 = tpu.matmul %13, %7, %cst_7 {dimension_numbers = #tpu.dot_dimension_numbers<[1], [0], [0], [1], [0, 0, 1, 1], [], []>} : vector<8x8xf32>, vector<8x8xf32>, vector<8x8xf32> -> vector<8x8xf32>
    %18 = vector.broadcast %16 : vector<8x1xf32> to vector<8x8xf32>
    %19 = arith.mulf %17, %18 : vector<8x8xf32>
    %20 = vector.extract_strided_slice %2 {offsets = [0, 8], sizes = [8, 8], strides = [1, 1]} : vector<16x96xf32> to vector<8x8xf32>
    %cst_8 = arith.constant 0.353553385 : f32
    %21 = vector.broadcast %cst_8 : f32 to vector<8x8xf32>
    %22 = arith.mulf %20, %21 : vector<8x8xf32>
    %23 = vector.extract_strided_slice %2 {offsets = [0, 40], sizes = [8, 8], strides = [1, 1]} : vector<16x96xf32> to vector<8x8xf32>
    %24 = vector.extract_strided_slice %2 {offsets = [0, 72], sizes = [8, 8], strides = [1, 1]} : vector<16x96xf32> to vector<8x8xf32>
    "tpu.trace_start"() <{level = 10 : i32, message = "nd,md->nm"}> : () -> ()
    %cst_9 = arith.constant dense<0.000000e+00> : vector<8x8xf32>
    %25 = tpu.matmul %22, %23, %cst_9 {dimension_numbers = #tpu.dot_dimension_numbers<[1], [1], [0], [0], [0, 0, 1, 0], [], []>} : vector<8x8xf32>, vector<8x8xf32>, vector<8x8xf32> -> vector<8x8xf32>
    "tpu.trace_stop"() : () -> ()
    %cst_10 = arith.constant dense<0xFF800000> : vector<8xf32>
    %26 = vector.multi_reduction <maximumf>, %25, %cst_10 [1] : vector<8x8xf32> to vector<8xf32>
    %27 = vector.shape_cast %26 : vector<8xf32> to vector<8x1xf32>
    %28 = vector.broadcast %27 : vector<8x1xf32> to vector<8x8xf32>
    %29 = arith.subf %25, %28 : vector<8x8xf32>
    %30 = math.exp %29 : vector<8x8xf32>
    %cst_11 = arith.constant dense<0.000000e+00> : vector<8xf32>
    %31 = vector.multi_reduction <add>, %30, %cst_11 [1] : vector<8x8xf32> to vector<8xf32>
    %32 = vector.shape_cast %31 : vector<8xf32> to vector<8x1xf32>
    %33 = tpu.reciprocal %32 : vector<8x1xf32> -> vector<8x1xf32>
    %cst_12 = arith.constant dense<0.000000e+00> : vector<8x8xf32>
    %34 = tpu.matmul %30, %24, %cst_12 {dimension_numbers = #tpu.dot_dimension_numbers<[1], [0], [0], [1], [0, 0, 1, 1], [], []>} : vector<8x8xf32>, vector<8x8xf32>, vector<8x8xf32> -> vector<8x8xf32>
    %35 = vector.broadcast %33 : vector<8x1xf32> to vector<8x8xf32>
    %36 = arith.mulf %34, %35 : vector<8x8xf32>
    %37 = vector.extract_strided_slice %2 {offsets = [0, 16], sizes = [8, 8], strides = [1, 1]} : vector<16x96xf32> to vector<8x8xf32>
    %cst_13 = arith.constant 0.353553385 : f32
    %38 = vector.broadcast %cst_13 : f32 to vector<8x8xf32>
    %39 = arith.mulf %37, %38 : vector<8x8xf32>
    %40 = vector.extract_strided_slice %2 {offsets = [0, 48], sizes = [8, 8], strides = [1, 1]} : vector<16x96xf32> to vector<8x8xf32>
    %41 = vector.extract_strided_slice %2 {offsets = [0, 80], sizes = [8, 8], strides = [1, 1]} : vector<16x96xf32> to vector<8x8xf32>
    "tpu.trace_start"() <{level = 10 : i32, message = "nd,md->nm"}> : () -> ()
    %cst_14 = arith.constant dense<0.000000e+00> : vector<8x8xf32>
    %42 = tpu.matmul %39, %40, %cst_14 {dimension_numbers = #tpu.dot_dimension_numbers<[1], [1], [0], [0], [0, 0, 1, 0], [], []>} : vector<8x8xf32>, vector<8x8xf32>, vector<8x8xf32> -> vector<8x8xf32>
    "tpu.trace_stop"() : () -> ()
    %cst_15 = arith.constant dense<0xFF800000> : vector<8xf32>
    %43 = vector.multi_reduction <maximumf>, %42, %cst_15 [1] : vector<8x8xf32> to vector<8xf32>
    %44 = vector.shape_cast %43 : vector<8xf32> to vector<8x1xf32>
    %45 = vector.broadcast %44 : vector<8x1xf32> to vector<8x8xf32>
    %46 = arith.subf %42, %45 : vector<8x8xf32>
    %47 = math.exp %46 : vector<8x8xf32>
    %cst_16 = arith.constant dense<0.000000e+00> : vector<8xf32>
    %48 = vector.multi_reduction <add>, %47, %cst_16 [1] : vector<8x8xf32> to vector<8xf32>
    %49 = vector.shape_cast %48 : vector<8xf32> to vector<8x1xf32>
    %50 = tpu.reciprocal %49 : vector<8x1xf32> -> vector<8x1xf32>
    %cst_17 = arith.constant dense<0.000000e+00> : vector<8x8xf32>
    %51 = tpu.matmul %47, %41, %cst_17 {dimension_numbers = #tpu.dot_dimension_numbers<[1], [0], [0], [1], [0, 0, 1, 1], [], []>} : vector<8x8xf32>, vector<8x8xf32>, vector<8x8xf32> -> vector<8x8xf32>
    %52 = vector.broadcast %50 : vector<8x1xf32> to vector<8x8xf32>
    %53 = arith.mulf %51, %52 : vector<8x8xf32>
    %54 = vector.extract_strided_slice %2 {offsets = [0, 24], sizes = [8, 8], strides = [1, 1]} : vector<16x96xf32> to vector<8x8xf32>
    %cst_18 = arith.constant 0.353553385 : f32
    %55 = vector.broadcast %cst_18 : f32 to vector<8x8xf32>
    %56 = arith.mulf %54, %55 : vector<8x8xf32>
    %57 = vector.extract_strided_slice %2 {offsets = [0, 56], sizes = [8, 8], strides = [1, 1]} : vector<16x96xf32> to vector<8x8xf32>
    %58 = vector.extract_strided_slice %2 {offsets = [0, 88], sizes = [8, 8], strides = [1, 1]} : vector<16x96xf32> to vector<8x8xf32>
    "tpu.trace_start"() <{level = 10 : i32, message = "nd,md->nm"}> : () -> ()
    %cst_19 = arith.constant dense<0.000000e+00> : vector<8x8xf32>
    %59 = tpu.matmul %56, %57, %cst_19 {dimension_numbers = #tpu.dot_dimension_numbers<[1], [1], [0], [0], [0, 0, 1, 0], [], []>} : vector<8x8xf32>, vector<8x8xf32>, vector<8x8xf32> -> vector<8x8xf32>
    "tpu.trace_stop"() : () -> ()
    %cst_20 = arith.constant dense<0xFF800000> : vector<8xf32>
    %60 = vector.multi_reduction <maximumf>, %59, %cst_20 [1] : vector<8x8xf32> to vector<8xf32>
    %61 = vector.shape_cast %60 : vector<8xf32> to vector<8x1xf32>
    %62 = vector.broadcast %61 : vector<8x1xf32> to vector<8x8xf32>
    %63 = arith.subf %59, %62 : vector<8x8xf32>
    %64 = math.exp %63 : vector<8x8xf32>
    %cst_21 = arith.constant dense<0.000000e+00> : vector<8xf32>
    %65 = vector.multi_reduction <add>, %64, %cst_21 [1] : vector<8x8xf32> to vector<8xf32>
    %66 = vector.shape_cast %65 : vector<8xf32> to vector<8x1xf32>
    %67 = tpu.reciprocal %66 : vector<8x1xf32> -> vector<8x1xf32>
    %cst_22 = arith.constant dense<0.000000e+00> : vector<8x8xf32>
    %68 = tpu.matmul %64, %58, %cst_22 {dimension_numbers = #tpu.dot_dimension_numbers<[1], [0], [0], [1], [0, 0, 1, 1], [], []>} : vector<8x8xf32>, vector<8x8xf32>, vector<8x8xf32> -> vector<8x8xf32>
    %69 = vector.broadcast %67 : vector<8x1xf32> to vector<8x8xf32>
    %70 = arith.mulf %68, %69 : vector<8x8xf32>
    %71 = tpu.concatenate %19, %36, %53, %70 in 1 : vector<8x8xf32>, vector<8x8xf32>, vector<8x8xf32>, vector<8x8xf32> -> vector<8x32xf32>
    %72 = vector.extract_strided_slice %2 {offsets = [8, 0], sizes = [8, 8], strides = [1, 1]} : vector<16x96xf32> to vector<8x8xf32>
    %cst_23 = arith.constant 0.353553385 : f32
    %73 = vector.broadcast %cst_23 : f32 to vector<8x8xf32>
    %74 = arith.mulf %72, %73 : vector<8x8xf32>
    %75 = vector.extract_strided_slice %2 {offsets = [8, 32], sizes = [8, 8], strides = [1, 1]} : vector<16x96xf32> to vector<8x8xf32>
    %76 = vector.extract_strided_slice %2 {offsets = [8, 64], sizes = [8, 8], strides = [1, 1]} : vector<16x96xf32> to vector<8x8xf32>
    "tpu.trace_start"() <{level = 10 : i32, message = "nd,md->nm"}> : () -> ()
    %cst_24 = arith.constant dense<0.000000e+00> : vector<8x8xf32>
    %77 = tpu.matmul %74, %75, %cst_24 {dimension_numbers = #tpu.dot_dimension_numbers<[1], [1], [0], [0], [0, 0, 1, 0], [], []>} : vector<8x8xf32>, vector<8x8xf32>, vector<8x8xf32> -> vector<8x8xf32>
    "tpu.trace_stop"() : () -> ()
    %cst_25 = arith.constant dense<0xFF800000> : vector<8xf32>
    %78 = vector.multi_reduction <maximumf>, %77, %cst_25 [1] : vector<8x8xf32> to vector<8xf32>
    %79 = vector.shape_cast %78 : vector<8xf32> to vector<8x1xf32>
    %80 = vector.broadcast %79 : vector<8x1xf32> to vector<8x8xf32>
    %81 = arith.subf %77, %80 : vector<8x8xf32>
    %82 = math.exp %81 : vector<8x8xf32>
    %cst_26 = arith.constant dense<0.000000e+00> : vector<8xf32>
    %83 = vector.multi_reduction <add>, %82, %cst_26 [1] : vector<8x8xf32> to vector<8xf32>
    %84 = vector.shape_cast %83 : vector<8xf32> to vector<8x1xf32>
    %85 = tpu.reciprocal %84 : vector<8x1xf32> -> vector<8x1xf32>
    %cst_27 = arith.constant dense<0.000000e+00> : vector<8x8xf32>
    %86 = tpu.matmul %82, %76, %cst_27 {dimension_numbers = #tpu.dot_dimension_numbers<[1], [0], [0], [1], [0, 0, 1, 1], [], []>} : vector<8x8xf32>, vector<8x8xf32>, vector<8x8xf32> -> vector<8x8xf32>
    %87 = vector.broadcast %85 : vector<8x1xf32> to vector<8x8xf32>
    %88 = arith.mulf %86, %87 : vector<8x8xf32>
    %89 = vector.extract_strided_slice %2 {offsets = [8, 8], sizes = [8, 8], strides = [1, 1]} : vector<16x96xf32> to vector<8x8xf32>
    %cst_28 = arith.constant 0.353553385 : f32
    %90 = vector.broadcast %cst_28 : f32 to vector<8x8xf32>
    %91 = arith.mulf %89, %90 : vector<8x8xf32>
    %92 = vector.extract_strided_slice %2 {offsets = [8, 40], sizes = [8, 8], strides = [1, 1]} : vector<16x96xf32> to vector<8x8xf32>
    %93 = vector.extract_strided_slice %2 {offsets = [8, 72], sizes = [8, 8], strides = [1, 1]} : vector<16x96xf32> to vector<8x8xf32>
    "tpu.trace_start"() <{level = 10 : i32, message = "nd,md->nm"}> : () -> ()
    %cst_29 = arith.constant dense<0.000000e+00> : vector<8x8xf32>
    %94 = tpu.matmul %91, %92, %cst_29 {dimension_numbers = #tpu.dot_dimension_numbers<[1], [1], [0], [0], [0, 0, 1, 0], [], []>} : vector<8x8xf32>, vector<8x8xf32>, vector<8x8xf32> -> vector<8x8xf32>
    "tpu.trace_stop"() : () -> ()
    %cst_30 = arith.constant dense<0xFF800000> : vector<8xf32>
    %95 = vector.multi_reduction <maximumf>, %94, %cst_30 [1] : vector<8x8xf32> to vector<8xf32>
    %96 = vector.shape_cast %95 : vector<8xf32> to vector<8x1xf32>
    %97 = vector.broadcast %96 : vector<8x1xf32> to vector<8x8xf32>
    %98 = arith.subf %94, %97 : vector<8x8xf32>
    %99 = math.exp %98 : vector<8x8xf32>
    %cst_31 = arith.constant dense<0.000000e+00> : vector<8xf32>
    %100 = vector.multi_reduction <add>, %99, %cst_31 [1] : vector<8x8xf32> to vector<8xf32>
    %101 = vector.shape_cast %100 : vector<8xf32> to vector<8x1xf32>
    %102 = tpu.reciprocal %101 : vector<8x1xf32> -> vector<8x1xf32>
    %cst_32 = arith.constant dense<0.000000e+00> : vector<8x8xf32>
    %103 = tpu.matmul %99, %93, %cst_32 {dimension_numbers = #tpu.dot_dimension_numbers<[1], [0], [0], [1], [0, 0, 1, 1], [], []>} : vector<8x8xf32>, vector<8x8xf32>, vector<8x8xf32> -> vector<8x8xf32>
    %104 = vector.broadcast %102 : vector<8x1xf32> to vector<8x8xf32>
    %105 = arith.mulf %103, %104 : vector<8x8xf32>
    %106 = vector.extract_strided_slice %2 {offsets = [8, 16], sizes = [8, 8], strides = [1, 1]} : vector<16x96xf32> to vector<8x8xf32>
    %cst_33 = arith.constant 0.353553385 : f32
    %107 = vector.broadcast %cst_33 : f32 to vector<8x8xf32>
    %108 = arith.mulf %106, %107 : vector<8x8xf32>
    %109 = vector.extract_strided_slice %2 {offsets = [8, 48], sizes = [8, 8], strides = [1, 1]} : vector<16x96xf32> to vector<8x8xf32>
    %110 = vector.extract_strided_slice %2 {offsets = [8, 80], sizes = [8, 8], strides = [1, 1]} : vector<16x96xf32> to vector<8x8xf32>
    "tpu.trace_start"() <{level = 10 : i32, message = "nd,md->nm"}> : () -> ()
    %cst_34 = arith.constant dense<0.000000e+00> : vector<8x8xf32>
    %111 = tpu.matmul %108, %109, %cst_34 {dimension_numbers = #tpu.dot_dimension_numbers<[1], [1], [0], [0], [0, 0, 1, 0], [], []>} : vector<8x8xf32>, vector<8x8xf32>, vector<8x8xf32> -> vector<8x8xf32>
    "tpu.trace_stop"() : () -> ()
    %cst_35 = arith.constant dense<0xFF800000> : vector<8xf32>
    %112 = vector.multi_reduction <maximumf>, %111, %cst_35 [1] : vector<8x8xf32> to vector<8xf32>
    %113 = vector.shape_cast %112 : vector<8xf32> to vector<8x1xf32>
    %114 = vector.broadcast %113 : vector<8x1xf32> to vector<8x8xf32>
    %115 = arith.subf %111, %114 : vector<8x8xf32>
    %116 = math.exp %115 : vector<8x8xf32>
    %cst_36 = arith.constant dense<0.000000e+00> : vector<8xf32>
    %117 = vector.multi_reduction <add>, %116, %cst_36 [1] : vector<8x8xf32> to vector<8xf32>
    %118 = vector.shape_cast %117 : vector<8xf32> to vector<8x1xf32>
    %119 = tpu.reciprocal %118 : vector<8x1xf32> -> vector<8x1xf32>
    %cst_37 = arith.constant dense<0.000000e+00> : vector<8x8xf32>
    %120 = tpu.matmul %116, %110, %cst_37 {dimension_numbers = #tpu.dot_dimension_numbers<[1], [0], [0], [1], [0, 0, 1, 1], [], []>} : vector<8x8xf32>, vector<8x8xf32>, vector<8x8xf32> -> vector<8x8xf32>
    %121 = vector.broadcast %119 : vector<8x1xf32> to vector<8x8xf32>
    %122 = arith.mulf %120, %121 : vector<8x8xf32>
    %123 = vector.extract_strided_slice %2 {offsets = [8, 24], sizes = [8, 8], strides = [1, 1]} : vector<16x96xf32> to vector<8x8xf32>
    %cst_38 = arith.constant 0.353553385 : f32
    %124 = vector.broadcast %cst_38 : f32 to vector<8x8xf32>
    %125 = arith.mulf %123, %124 : vector<8x8xf32>
    %126 = vector.extract_strided_slice %2 {offsets = [8, 56], sizes = [8, 8], strides = [1, 1]} : vector<16x96xf32> to vector<8x8xf32>
    %127 = vector.extract_strided_slice %2 {offsets = [8, 88], sizes = [8, 8], strides = [1, 1]} : vector<16x96xf32> to vector<8x8xf32>
    "tpu.trace_start"() <{level = 10 : i32, message = "nd,md->nm"}> : () -> ()
    %cst_39 = arith.constant dense<0.000000e+00> : vector<8x8xf32>
    %128 = tpu.matmul %125, %126, %cst_39 {dimension_numbers = #tpu.dot_dimension_numbers<[1], [1], [0], [0], [0, 0, 1, 0], [], []>} : vector<8x8xf32>, vector<8x8xf32>, vector<8x8xf32> -> vector<8x8xf32>
    "tpu.trace_stop"() : () -> ()
    %cst_40 = arith.constant dense<0xFF800000> : vector<8xf32>
    %129 = vector.multi_reduction <maximumf>, %128, %cst_40 [1] : vector<8x8xf32> to vector<8xf32>
    %130 = vector.shape_cast %129 : vector<8xf32> to vector<8x1xf32>
    %131 = vector.broadcast %130 : vector<8x1xf32> to vector<8x8xf32>
    %132 = arith.subf %128, %131 : vector<8x8xf32>
    %133 = math.exp %132 : vector<8x8xf32>
    %cst_41 = arith.constant dense<0.000000e+00> : vector<8xf32>
    %134 = vector.multi_reduction <add>, %133, %cst_41 [1] : vector<8x8xf32> to vector<8xf32>
    %135 = vector.shape_cast %134 : vector<8xf32> to vector<8x1xf32>
    %136 = tpu.reciprocal %135 : vector<8x1xf32> -> vector<8x1xf32>
    %cst_42 = arith.constant dense<0.000000e+00> : vector<8x8xf32>
    %137 = tpu.matmul %133, %127, %cst_42 {dimension_numbers = #tpu.dot_dimension_numbers<[1], [0], [0], [1], [0, 0, 1, 1], [], []>} : vector<8x8xf32>, vector<8x8xf32>, vector<8x8xf32> -> vector<8x8xf32>
    %138 = vector.broadcast %136 : vector<8x1xf32> to vector<8x8xf32>
    %139 = arith.mulf %137, %138 : vector<8x8xf32>
    %140 = tpu.concatenate %88, %105, %122, %139 in 1 : vector<8x8xf32>, vector<8x8xf32>, vector<8x8xf32>, vector<8x8xf32> -> vector<8x32xf32>
    %141 = tpu.concatenate %71, %140 in 0 : vector<8x32xf32>, vector<8x32xf32> -> vector<16x32xf32>
    %c0_43 = arith.constant 0 : index
    %c0_44 = arith.constant 0 : index
    %142 = vector.load %arg3[%c0_43, %c0_44] : memref<32x32xf32, #tpu.memory_space<vmem>>, vector<32x32xf32>
    %cst_45 = arith.constant dense<0.000000e+00> : vector<16x32xf32>
    %143 = tpu.matmul %141, %142, %cst_45 {dimension_numbers = #tpu.dot_dimension_numbers<[1], [0], [0], [1], [0, 0, 1, 1], [], []>} : vector<16x32xf32>, vector<32x32xf32>, vector<16x32xf32> -> vector<16x32xf32>
    %c0_46 = arith.constant 0 : index
    %c0_47 = arith.constant 0 : index
    %144 = vector.load %arg4[%c0_46, %c0_47] : memref<1x32xf32, #tpu.memory_space<vmem>>, vector<1x32xf32>
    %145 = vector.broadcast %144 : vector<1x32xf32> to vector<16x32xf32>
    %146 = arith.addf %143, %145 : vector<16x32xf32>
    %c0_48 = arith.constant 0 : index
    %c0_49 = arith.constant 0 : index
    %147 = vector.load %arg5[%c0_48, %c0_49] : memref<16x32xf32, #tpu.memory_space<vmem>>, vector<16x32xf32>
    tpu.vector_store %arg5[%c0_48, %c0_49], %146 {strides = array<i32>} : memref<16x32xf32, #tpu.memory_space<vmem>>, vector<16x32xf32>,
    return
  }
  func.func @transform_0(%arg0: i32) -> (i32, i32) {
    %c0_i32 = arith.constant 0 : i32
    %c0_i32_0 = arith.constant 0 : i32
    %c0_i32_1 = arith.constant 0 : i32
    return %c0_i32, %c0_i32_0 : i32, i32
  }
  func.func @transform_1(%arg0: i32) -> (i32, i32) {
    %c0_i32 = arith.constant 0 : i32
    %c0_i32_0 = arith.constant 0 : i32
    %c0_i32_1 = arith.constant 0 : i32
    return %c0_i32, %c0_i32_0 : i32, i32
  }
  func.func @transform_2(%arg0: i32) -> (i32, i32) {
    %c0_i32 = arith.constant 0 : i32
    %c0_i32_0 = arith.constant 0 : i32
    %c0_i32_1 = arith.constant 0 : i32
    return %c0_i32, %c0_i32_0 : i32, i32
  }
  func.func @transform_3(%arg0: i32) -> (i32, i32) {
    %c0_i32 = arith.constant 0 : i32
    %c0_i32_0 = arith.constant 0 : i32
    %c0_i32_1 = arith.constant 0 : i32
    return %c0_i32, %c0_i32_0 : i32, i32
  }
  func.func @transform_4(%arg0: i32) -> (i32, i32) {
    %c0_i32 = arith.constant 0 : i32
    %c0_i32_0 = arith.constant 0 : i32
    %c0_i32_1 = arith.constant 0 : i32
    return %c0_i32, %c0_i32_0 : i32, i32
  }
}

</mosaic_0001>

<bundles_post_ra>
// kernel: tpu_custom_call.1
= control target key start
LH: loop header
LB: loop body
LE: loop exit
PB: predicated region body
PF: predicated region fallthrough
CT: control target
= control target key end

     0   :  { %9 = vsyncpa [#allocation3], 0  ;;  %s2146_s0 = inlined_call_operand.hbm [shape: f32[16,32], index: 0, kind: input, shape index: {}]   ;;  %s2147_s1 = inlined_call_operand.hbm [shape: f32[32,96], index: 1, kind: input, shape index: {}]   ;;  %s2148_s2 = inlined_call_operand.hbm [shape: f32[32,32], index: 2, kind: input, shape index: {}]   ;;  %s2149_s3 = inlined_call_operand.vmem [shape: f32[1,32], index: 3, kind: input, shape index: {}]   ;;  %s2150_s4 = inlined_call_operand.hbm [shape: f32[16,32], index: 4, kind: output, shape index: {}]  }
   0x1   :  { %10 = vsyncpa [#allocation6], 0 }
   0x2   :  { %11 = vsyncpa [#allocation4], 0  ;;  %s1928_s15 = smov [#allocation5]   ;;  %s1929_s17 = smov [#allocation2]  }
   0x3   :  { %s29_s16 = sshll.u32 %s1928_s15, 4  ;;  %s17_s18 = sshll.u32 %s1929_s17, 4  ;;  %s30_s16 = int_to_ptr.vmem [resolvable:$true] %s29_s16  ;;  %s18_s18 = int_to_ptr.vmem [resolvable:$true] %s17_s18 }
   0x4   :  { %s1850_s19 = scalar_lea.vmem %s30_s16, 512  ;;  %p1855_p1 = scmp.lt.s32.totalorder %s30_s16, %s30_s16 }
   0x5   :  { %p1851_p0 = scmp.ne.s32.totalorder %s30_s16, %s1850_s19  ;;  %p1856_p2 = scmp.lt.s32.totalorder %s1850_s19, %s1850_s19 }
   0x7   :  { %p1857_p3 = por %p1856_p2, %p1855_p1 }
   0x9   :  { %p1858_p4 = pnand %p1857_p3, %p1851_p0 }
   0xb   :  { %1861 = shalt.err (!%p1858_p4)
}
   0xc   :  { %s1930_s20 = smov 128   ;;  %s1931_s21 = smov 8  }
   0xd   :  { %35 = dma.hbm_to_vmem [thread:$0]  %s2147_s1, 512, %s30_s16, [#allocation6], %s1930_s20, %s1930_s20, %s1931_s21  }
   0xe   :  { %s1870_s24 = scalar_lea.vmem %s18_s18, 256  ;;  %p1875_p6 = scmp.lt.s32.totalorder %s18_s18, %s18_s18 }
   0xf   :  { %p1871_p5 = scmp.ne.s32.totalorder %s18_s18, %s1870_s24  ;;  %p1876_p7 = scmp.lt.s32.totalorder %s1870_s24, %s1870_s24 }
  0x11   :  { %p1877_p8 = por %p1876_p7, %p1875_p6 }
  0x13   :  { %p1878_p9 = pnand %p1877_p8, %p1871_p5 }
  0x15   :  { %1881 = shalt.err (!%p1878_p9)
}
  0x16   :  { %23 = dma.hbm_to_vmem [thread:$0]  %s2146_s0, 256, %s18_s18, [#allocation3], %s1930_s20, %s1930_s20, %s1931_s21  }
  0x17   :  { %s1932_s27 = smov [#allocation7]  }
  0x18   :  { %s41_s28 = sshll.u32 %s1932_s27, 4  ;;  %s42_s28 = int_to_ptr.vmem [resolvable:$true] %s41_s28 }
  0x19   :  { %s1890_s29 = scalar_lea.vmem %s42_s28, 512  ;;  %p1895_p11 = scmp.lt.s32.totalorder %s42_s28, %s42_s28 }
  0x1a   :  { %p1891_p10 = scmp.ne.s32.totalorder %s42_s28, %s1890_s29  ;;  %p1896_p12 = scmp.lt.s32.totalorder %s1890_s29, %s1890_s29 }
  0x1c   :  { %p1897_p13 = por %p1896_p12, %p1895_p11 }
  0x1e   :  { %p1898_p0 = pnand %p1897_p13, %p1891_p10 }
  0x20   :  { %1901 = shalt.err (!%p1898_p0)
}
  0x21   :  { %47 = dma.hbm_to_vmem [thread:$0]  %s2148_s2, 512, %s42_s28, [#allocation6], %s1930_s20, %s1930_s20, %s1931_s21  }
  0x22   :  { %1922 = dma.done.wait [#allocation3], 256  }
  0x23   :  { %1923 = vsyncadd [#allocation3], 4294967040 }
  0x24   :  { %1924 = dma.done.wait [#allocation6], 1024  }
  0x25   :  { %1925 = vsyncadd [#allocation6], 4294966272  ;;  %vm65_vm0 = vcmask 261120   ;;  %v64_v0 = vld [vmem:[#allocation5 + $0x18] sm:$0xff]  ;;  %v63_v1 = vld [vmem:[#allocation5 + $0x10] sm:$0xff]  ;;  %v1933_v6 = vmov 0.0  }
  0x26   :  { %1687 = vmatprep.subr.mxu0 %v64_v0  ;;  %v59_v2 = vld [vmem:[#allocation2] sm:$0xff]  ;;  %v62_v3 = vld [vmem:[#allocation5 + $0x8] sm:$0xff]  ;;  %v61_v4 = vld [vmem:[#allocation5] sm:$0xff]  ;;  %1698 = vmatprep.subr.mxu1 %v1933_v6  ;;  %vm1934_vm1 = vmmov 0   ;;  %s1935_s0 = smov 64   ;;  %s1936_s2 = smov 96  }
  0x27   :  { %1688 = vmatpush3.msra.mxu0 %v64_v0  ;;  %1695 = vmatprep.mubr.msk.f32.mxu0 %vm65_vm0, %v59_v2  ;;  %v60_v5 = vld [vmem:[#allocation2 + $0x8] sm:$0xff]  ;;  %s1937_s5 = smov 88   ;;  %s1938_s6 = smov 120   ;;  %vm151_vm2 = vcmask 64512   ;;  %vm822_vm3 = vcmask 130048   ;;  %vm824_vm4 = vcmask 195584  }
  0x28   :  { %1689 = vmatprep.subr.mxu0 %v63_v1  ;;  %1700 = vmatprep.mubr.msk.f32.mxu1 %vm1934_vm1, %v1933_v6  ;;  %s1939_s7 = smov 80   ;;  %s1940_s8 = smov 112  }
  0x29   :  { %1690 = vmatpush3.msra.mxu0 %v63_v1  ;;  %s1941_s9 = smov 72   ;;  %s1942_s10 = smov 104  }
  0x2a   :  { %1691 = vmatprep.subr.mxu0 %v62_v3  ;;  %s1943_s11 = smov 48   ;;  %s1944_s12 = smov 56  }
  0x2b   :  { %1692 = vmatpush3.msra.mxu0 %v62_v3  ;;  %s1945_s13 = smov 40   ;;  %s1946_s14 = smov 16  }
  0x2c   :  { %1693 = vmatprep.subr.mxu0 %v61_v4  ;;  %s1947_s15 = smov 24   ;;  %s1948_s18 = smov [#allocation8]  }
  0x2d   :  { %1694 = vmatpush3.msra.mxu0 %v61_v4  ;;  %s1601_s19 = sshll.u32 %s1948_s18, 4  ;;  %s1602_s19 = int_to_ptr.vmem [resolvable:$true] %s1601_s19 }
  0x2e   :  { %1696 = vmatmul.mubr.msk.f32.vlgmr.msra.gmra.mxu0 %vm65_vm0, %v60_v5  ;;  %1718 = vmatprep.subr.mxu0 %v1933_v6  ;;  %s1902_s22 = scalar_lea.vmem %s1602_s19, 256  ;;  %p1907_p2 = scmp.lt.s32.totalorder %s1602_s19, %s1602_s19 }
  0x2f   :  { %1720 = vmatprep.mubr.msk.f32.mxu0 %vm1934_vm1, %v1933_v6  ;;  %p1903_p1 = scmp.ne.s32.totalorder %s1602_s19, %s1902_s22  ;;  %p1908_p3 = scmp.lt.s32.totalorder %s1902_s22, %s1902_s22 }
  0x31   :  { %p1909_p4 = por %p1908_p3, %p1907_p2 }
  0x33   :  { %p1910_p5 = pnand %p1909_p4, %p1903_p1 }
  0xee   :  { %v2000_v7 = vpop.f32.mrf.mxu0 }
  0xef   :  { %v826_v10 = vmul.f32 0.35355338, %v2000_v7 }
  0xf0   :  { %v2002_v8 = vpop.f32.mrf.mxu0 }
  0xf1   :  { %237 = vrot.lane.b32.xlu1 %v2002_v8, %s1935_s0  ;;  %149 = vrot.lane.b32.xlu0 %v2002_v8, %s1936_s2  ;;  %v147_v9 = vmul.f32 0.35355338, %v2002_v8 }
  0xf5   :  { %316 = vrot.lane.b32.xlu1 %v2002_v8, %s1937_s5 }
  0xf9   :  { %314 = vrot.lane.b32.xlu1 %v147_v9, %s1938_s6 }
  0xfd   :  { %481 = vrot.lane.b32.xlu1 %v2002_v8, %s1939_s7 }
 0x101   :  { %479 = vrot.lane.b32.xlu1 %v147_v9, %s1940_s8 }
 0x105   :  { %646 = vrot.lane.b32.xlu1 %v2002_v8, %s1941_s9 }
 0x109   :  { %644 = vrot.lane.b32.xlu1 %v147_v9, %s1942_s10 }
 0x10d   :  { %828 = vrot.lane.b32.xlu1 %v2000_v7, %s1936_s2 }
 0x111   :  { %994 = vrot.lane.b32.xlu1 %v2000_v7, %s1937_s5 }
 0x115   :  { %1159 = vrot.lane.b32.xlu1 %v2000_v7, %s1939_s7 }
 0x119   :  { %1157 = vrot.lane.b32.xlu1 %v826_v10, %s1940_s8 }
 0x11d   :  { %1324 = vrot.lane.b32.xlu1 %v2000_v7, %s1941_s9 }
 0x121   :  { %1322 = vrot.lane.b32.xlu1 %v826_v10, %s1942_s10 }
 0x163   :  { %v238_v11 = vpop.permute.xlu1 %237  ;;  %v150_v12 = vpop.permute.xlu0 %149 }
 0x164   :  { %1699 = vmatpush3.xpose.msk.msra.mxu1 %vm151_vm2, %v150_v12 }
 0x165   :  { %1703 = vmatprep.subr.mxu1 %v1933_v6 }
 0x167   :  { %v317_v13 = vpop.permute.xlu1 %316  ;;  %1701 = vmatmul.mubr.msk.f32.vlgmr.msra.gmra.mxu1 %vm151_vm2, %v147_v9 }
 0x168   :  { %1704 = vmatpush3.msra.mxu1 %v238_v11  ;;  %1705 = vmatprep.mubr.msk.f32.mxu1 %vm1934_vm1, %v1933_v6 }
 0x169   :  { %1708 = vmatprep.subr.mxu1 %v1933_v6 }
 0x16b   :  { %v315_v14 = vpop.permute.xlu1 %314 }
 0x16f   :  { %v482_v15 = vpop.permute.xlu1 %481 }
 0x170   :  { %1719 = vmatpush3.xpose.msk.msra.mxu0 %vm151_vm2, %v482_v15 }
 0x171   :  { %1728 = vmatprep.subr.mxu0 %v1933_v6 }
 0x173   :  { %v480_v16 = vpop.permute.xlu1 %479 }
 0x174   :  { %1721 = vmatmul.mubr.msk.f32.vlgmr.msra.gmra.mxu0 %vm151_vm2, %v480_v16 }
 0x175   :  { %1730 = vmatprep.mubr.msk.f32.mxu0 %vm1934_vm1, %v1933_v6 }
 0x177   :  { %v647_v17 = vpop.permute.xlu1 %646 }
 0x178   :  { %1729 = vmatpush3.xpose.msk.msra.mxu0 %vm151_vm2, %v647_v17 }
 0x179   :  { %1738 = vmatprep.subr.mxu0 %v1933_v6 }
 0x17b   :  { %v645_v18 = vpop.permute.xlu1 %644 }
 0x17c   :  { %1731 = vmatmul.mubr.msk.f32.vlgmr.msra.gmra.mxu0 %vm151_vm2, %v645_v18 }
 0x17d   :  { %1740 = vmatprep.mubr.msk.f32.mxu0 %vm1934_vm1, %v1933_v6 }
 0x17f   :  { %v829_v19 = vpop.permute.xlu1 %828 }
 0x180   :  { %1739 = vmatpush3.xpose.msk.msra.mxu0 %vm151_vm2, %v829_v19 }
 0x181   :  { %1748 = vmatprep.subr.mxu0 %v1933_v6 }
 0x183   :  { %1741 = vmatmul.mubr.msk.f32.vlgmr.msra.gmra.mxu0 %vm151_vm2, %v826_v10  ;;  %v995_v20 = vpop.permute.xlu1 %994 }
 0x184   :  { %1749 = vmatpush3.xpose.msk.msra.mxu0 %vm151_vm2, %v995_v20  ;;  %1750 = vmatprep.mubr.msk.f32.mxu0 %vm1934_vm1, %v1933_v6 }
 0x185   :  { %1758 = vmatprep.subr.mxu0 %v1933_v6 }
 0x187   :  { %v1160_v33 = vpop.permute.xlu1 %1159 }
 0x18b   :  { %v1158_v34 = vpop.permute.xlu1 %1157 }
 0x18f   :  { %v1325_v39 = vpop.permute.xlu1 %1324 }
 0x193   :  { %v1323_v40 = vpop.permute.xlu1 %1322 }
 0x227   :  { %v223_v21 = vpop.f32.mrf.mxu1 }
 0x228   :  { %v227_v22 = vsel %vm151_vm2, %v223_v21, -inf }
 0x229   :  { %228 = vmax.xlane.f32.xlu0 %v227_v22  ;;  %v1702_v23 = vpop.f32.mrf.mxu1 }
 0x234   :  { %v2041_v24 = vpop.f32.mrf.mxu0 }
 0x235   :  { %v557_v31 = vsel %vm151_vm2, %v2041_v24, -inf }
 0x236   :  { %v1722_v25 = vpop.f32.mrf.mxu0 }
 0x23c   :  { %v2043_v26 = vpop.f32.mrf.mxu0 }
 0x23d   :  { %v722_v32 = vsel %vm151_vm2, %v2043_v26, -inf }
 0x23e   :  { %v1732_v27 = vpop.f32.mrf.mxu0 }
 0x23f   :  { %992 = vrot.lane.b32.xlu0 %v826_v10, %s1938_s6 }
 0x243   :  { %v2046_v28 = vpop.f32.mrf.mxu0 }
 0x244   :  { %v905_v29 = vsel %vm151_vm2, %v2046_v28, -inf }
 0x245   :  { %906 = vmax.xlane.f32.xlu1 %v905_v29  ;;  %v1742_v30 = vpop.f32.mrf.mxu0 }
 0x25e   :  { %558 = vmax.xlane.f32.xlu0 %v557_v31 }
 0x262   :  { %723 = vmax.xlane.f32.xlu0 %v722_v32 }
 0x2b2   :  { %v229_v35 = vpop.xlane.xlu0 %228 }
 0x2b3   :  { %v230_v36 = vsub.f32 %v223_v21, %v229_v35 }
 0x2b5   :  { %v231_v37 = vmul.f32 1.442695, %v230_v36 }
 0x2b6   :  { %v993_v38 = vpop.permute.xlu0 %992 }
 0x2b7   :  { %1810 = vpow2.f32 %v231_v37  ;;  %1751 = vmatmul.mubr.msk.f32.vlgmr.msra.gmra.mxu0 %vm151_vm2, %v993_v38 }
 0x2b8   :  { %1759 = vmatpush3.xpose.msk.msra.mxu0 %vm151_vm2, %v1160_v33  ;;  %1760 = vmatprep.mubr.msk.f32.mxu0 %vm1934_vm1, %v1933_v6 }
 0x2b9   :  { %1768 = vmatprep.subr.mxu0 %v1933_v6 }
 0x2bb   :  { %1761 = vmatmul.mubr.msk.f32.vlgmr.msra.gmra.mxu0 %vm151_vm2, %v1158_v34 }
 0x2bc   :  { %1769 = vmatpush3.xpose.msk.msra.mxu0 %vm151_vm2, %v1325_v39  ;;  %1770 = vmatprep.mubr.msk.f32.mxu0 %vm1934_vm1, %v1933_v6 }
 0x2bf   :  { %1771 = vmatmul.mubr.msk.f32.vlgmr.msra.gmra.mxu0 %vm151_vm2, %v1323_v40 }
 0x2c4   :  { %v2064_v41 = vpop.eup %1810 }
 0x2c5   :  { %1706 = vmatmul.mubr.msk.f32.vlgmr.msra.gmra.mxu1 %vm151_vm2, %v2064_v41  ;;  %v233_v32 = vsel %vm151_vm2, %v2064_v41, 0.0 }
 0x2c6   :  { %1709 = vmatpush3.xpose.msk.msra.mxu1 %vm151_vm2, %v317_v13  ;;  %1710 = vmatprep.mubr.msk.f32.mxu1 %vm1934_vm1, %v1933_v6 }
 0x2c7   :  { %1713 = vmatprep.subr.mxu1 %v1933_v6 }
 0x2c9   :  { %1711 = vmatmul.mubr.msk.f32.vlgmr.msra.gmra.mxu1 %vm151_vm2, %v315_v14 }
 0x2ca   :  { %1715 = vmatprep.mubr.msk.f32.mxu1 %vm1934_vm1, %v1933_v6 }
 0x2ce   :  { %v907_v3 = vpop.xlane.xlu1 %906 }
 0x2cf   :  { %v908_v4 = vsub.f32 %v2046_v28, %v907_v3 }
 0x2e7   :  { %v559_v56 = vpop.xlane.xlu0 %558 }
 0x2e8   :  { %v560_v57 = vsub.f32 %v2041_v24, %v559_v56  ;;  %v1503_v56 = vld [vmem:[#allocation7 + $0x8] sm:$0xff] }
 0x2ea   :  { %v561_v58 = vmul.f32 1.442695, %v560_v57  ;;  %v1502_v57 = vld [vmem:[#allocation7] sm:$0xff] }
 0x2eb   :  { %v724_v61 = vpop.xlane.xlu0 %723 }
 0x2ec   :  { %1812 = vpow2.f32 %v561_v58  ;;  %v725_v62 = vsub.f32 %v2043_v26, %v724_v61 }
 0x2ee   :  { %v726_v1 = vmul.f32 1.442695, %v725_v62 }
 0x2f9   :  { %v1813_v59 = vpop.eup %1812 }
 0x2fa   :  { %v563_v60 = vsel %vm151_vm2, %v1813_v59, 0.0 }
 0x377   :  { %v1066_v42 = vpop.f32.mrf.mxu0 }
 0x378   :  { %v1070_v43 = vsel %vm151_vm2, %v1066_v42, -inf }
 0x379   :  { %1071 = vmax.xlane.f32.xlu0 %v1070_v43  ;;  %v1752_v44 = vpop.f32.mrf.mxu0 }
 0x37b   :  { %v1231_v45 = vpop.f32.mrf.mxu0 }
 0x37c   :  { %v1235_v46 = vsel %vm151_vm2, %v1231_v45, -inf }
 0x37d   :  { %1236 = vmax.xlane.f32.xlu1 %v1235_v46  ;;  %v1762_v47 = vpop.f32.mrf.mxu0 }
 0x37f   :  { %v1396_v48 = vpop.f32.mrf.mxu0 }
 0x380   :  { %v1400_v49 = vsel %vm151_vm2, %v1396_v48, -inf }
 0x381   :  { %1401 = vmax.xlane.f32.xlu0 %v1400_v49  ;;  %v1772_v50 = vpop.f32.mrf.mxu0  ;;  %v1504_v49 = vld [vmem:[#allocation7 + $0x10] sm:$0xff] }
 0x385   :  { %v2078_v51 = vpop.f32.mrf.mxu1 }
 0x387   :  { %v1707_v52 = vpop.f32.mrf.mxu1 }
 0x389   :  { %v388_v53 = vpop.f32.mrf.mxu1 }
 0x38a   :  { %v392_v54 = vsel %vm151_vm2, %v388_v53, -inf }
 0x38b   :  { %393 = vmax.xlane.f32.xlu1 %v392_v54  ;;  %v1712_v55 = vpop.f32.mrf.mxu1 }
 0x397   :  { %567 = vrot.lane.b32.xlu0 %v2002_v8, %s1943_s11 }
 0x39b   :  { %1245 = vrot.lane.b32.xlu0 %v2000_v7, %s1943_s11 }
 0x39c   :  { %402 = vrot.lane.b32.xlu1 %v2002_v8, %s1944_s12 }
 0x3a0   :  { %732 = vrot.lane.b32.xlu1 %v2002_v8, %s1945_s13  ;;  %v909_v8 = vmul.f32 1.442695, %v908_v4 }
 0x3a4   :  { %915 = vrot.lane.b32.xlu1 %v2000_v7, %s1935_s0 }
 0x3a8   :  { %1080 = vrot.lane.b32.xlu1 %v2000_v7, %s1944_s12 }
 0x3ac   :  { %1410 = vrot.lane.b32.xlu1 %v2000_v7, %s1945_s13 }
 0x3d0   :  { %564 = vadd.xlane.f32.xlu1 %v563_v60 }
 0x402   :  { %v1072_v63 = vpop.xlane.xlu0 %1071 }
 0x403   :  { %v1073_v0 = vsub.f32 %v1066_v42, %v1072_v63 }
 0x405   :  { %v1074_v2 = vmul.f32 1.442695, %v1073_v0 }
 0x406   :  { %v1237_v10 = vpop.xlane.xlu1 %1236 }
 0x407   :  { %1814 = vpow2.f32 %v1074_v2  ;;  %v1238_v11 = vsub.f32 %v1231_v45, %v1237_v10 }
 0x408   :  { %1816 = vpow2.f32 %v726_v1 }
 0x409   :  { %v1239_v17 = vmul.f32 1.442695, %v1238_v11 }
 0x40a   :  { %v1402_v5 = vpop.xlane.xlu0 %1401 }
 0x40b   :  { %v1403_v7 = vsub.f32 %v1396_v48, %v1402_v5  ;;  %v1505_v48 = vld [vmem:[#allocation7 + $0x18] sm:$0xff] }
 0x40c   :  { %1778 = vmatprep.subr.mxu0 %v1505_v48 }
 0x40d   :  { %v1404_v9 = vmul.f32 1.442695, %v1403_v7  ;;  %1779 = vmatpush3.msra.mxu0 %v1505_v48 }
 0x40e   :  { %v568_v26 = vpop.permute.xlu0 %567  ;;  %1780 = vmatprep.subr.mxu0 %v1504_v49 }
 0x40f   :  { %1818 = vpow2.f32 %v1404_v9  ;;  %1781 = vmatpush3.msra.mxu0 %v1504_v49 }
 0x410   :  { %1820 = vpow2.f32 %v909_v8  ;;  %1782 = vmatprep.subr.mxu0 %v1503_v56 }
 0x411   :  { %1783 = vmatpush3.msra.mxu0 %v1503_v56 }
 0x412   :  { %v1246_v34 = vpop.permute.xlu0 %1245  ;;  %1784 = vmatprep.subr.mxu0 %v1502_v57 }
 0x413   :  { %1785 = vmatpush3.msra.mxu0 %v1502_v57 }
 0x414   :  { %v1815_v12 = vpop.eup %1814  ;;  %v394_v13 = vpop.xlane.xlu1 %393 }
 0x415   :  { %v395_v14 = vsub.f32 %v388_v53, %v394_v13  ;;  %v1076_v15 = vsel %vm151_vm2, %v1815_v12, 0.0  ;;  %v1817_v16 = vpop.eup %1816 }
 0x416   :  { %1077 = vadd.xlane.f32.xlu0 %v1076_v15  ;;  %v728_v20 = vsel %vm151_vm2, %v1817_v16, 0.0 }
 0x417   :  { %v396_v18 = vmul.f32 1.442695, %v395_v14 }
 0x418   :  { %v403_v19 = vpop.permute.xlu1 %402 }
 0x419   :  { %1822 = vpow2.f32 %v396_v18  ;;  %1714 = vmatpush3.msra.mxu1 %v403_v19 }
 0x41a   :  { %729 = vadd.xlane.f32.xlu0 %v728_v20  ;;  %1723 = vmatprep.subr.mxu1 %v1933_v6  ;;  %1824 = vpow2.f32 %v1239_v17 }
 0x41c   :  { %v1819_v21 = vpop.eup %1818  ;;  %v733_v27 = vpop.permute.xlu1 %732 }
 0x41d   :  { %v1406_v22 = vsel %vm151_vm2, %v1819_v21, 0.0  ;;  %v1821_v23 = vpop.eup %1820 }
 0x41e   :  { %1407 = vadd.xlane.f32.xlu1 %v1406_v22  ;;  %v911_v24 = vsel %vm151_vm2, %v1821_v23, 0.0 }
 0x420   :  { %v916_v31 = vpop.permute.xlu1 %915 }
 0x422   :  { %912 = vadd.xlane.f32.xlu1 %v911_v24 }
 0x424   :  { %v1081_v33 = vpop.permute.xlu1 %1080 }
 0x426   :  { %v1823_v25 = vpop.eup %1822 }
 0x427   :  { %1716 = vmatmul.mubr.msk.f32.vlgmr.msra.gmra.mxu1 %vm151_vm2, %v1823_v25  ;;  %v398_v28 = vsel %vm151_vm2, %v1823_v25, 0.0  ;;  %v1825_v29 = vpop.eup %1824 }
 0x428   :  { %1724 = vmatpush3.msra.mxu1 %v568_v26  ;;  %399 = vadd.xlane.f32.xlu0 %v398_v28  ;;  %v1241_v30 = vsel %vm151_vm2, %v1825_v29, 0.0  ;;  %v1411_v35 = vpop.permute.xlu1 %1410 }
 0x429   :  { %1725 = vmatprep.mubr.msk.f32.mxu1 %vm1934_vm1, %v1933_v6  ;;  %1733 = vmatprep.subr.mxu1 %v1933_v6 }
 0x42b   :  { %1726 = vmatmul.mubr.msk.f32.vlgmr.msra.gmra.mxu1 %vm151_vm2, %v1813_v59 }
 0x42c   :  { %1734 = vmatpush3.msra.mxu1 %v733_v27  ;;  %1242 = vadd.xlane.f32.xlu0 %v1241_v30 }
 0x42d   :  { %1735 = vmatprep.mubr.msk.f32.mxu1 %vm1934_vm1, %v1933_v6  ;;  %1743 = vmatprep.subr.mxu1 %v1933_v6 }
 0x42f   :  { %1736 = vmatmul.mubr.msk.f32.vlgmr.msra.gmra.mxu1 %vm151_vm2, %v1817_v16 }
 0x430   :  { %1744 = vmatpush3.msra.mxu1 %v916_v31  ;;  %234 = vadd.xlane.f32.xlu0 %v233_v32 }
 0x431   :  { %1745 = vmatprep.mubr.msk.f32.mxu1 %vm1934_vm1, %v1933_v6  ;;  %1753 = vmatprep.subr.mxu1 %v1933_v6 }
 0x433   :  { %1746 = vmatmul.mubr.msk.f32.vlgmr.msra.gmra.mxu1 %vm151_vm2, %v1821_v23 }
 0x434   :  { %1754 = vmatpush3.msra.mxu1 %v1081_v33  ;;  %1755 = vmatprep.mubr.msk.f32.mxu1 %vm1934_vm1, %v1933_v6 }
 0x435   :  { %1763 = vmatprep.subr.mxu1 %v1933_v6 }
 0x437   :  { %1756 = vmatmul.mubr.msk.f32.vlgmr.msra.gmra.mxu1 %vm151_vm2, %v1815_v12 }
 0x438   :  { %1764 = vmatpush3.msra.mxu1 %v1246_v34  ;;  %1765 = vmatprep.mubr.msk.f32.mxu1 %vm1934_vm1, %v1933_v6 }
 0x439   :  { %1773 = vmatprep.subr.mxu1 %v1933_v6 }
 0x43b   :  { %1766 = vmatmul.mubr.msk.f32.vlgmr.msra.gmra.mxu1 %vm151_vm2, %v1825_v29 }
 0x43c   :  { %1774 = vmatpush3.msra.mxu1 %v1411_v35  ;;  %1775 = vmatprep.mubr.msk.f32.mxu1 %vm1934_vm1, %v1933_v6 }
 0x43f   :  { %1776 = vmatmul.mubr.msk.f32.vlgmr.msra.gmra.mxu1 %vm151_vm2, %v1819_v21 }
 0x459   :  { %v565_v39 = vpop.xlane.xlu1 %564 }
 0x49f   :  { %v1078_v36 = vpop.xlane.xlu0 %1077 }
 0x4a3   :  { %v730_v37 = vpop.xlane.xlu0 %729 }
 0x4a7   :  { %v1408_v52 = vpop.xlane.xlu1 %1407 }
 0x4ab   :  { %v913_v10 = vpop.xlane.xlu1 %912 }
 0x4b1   :  { %v400_v38 = vpop.xlane.xlu0 %399 }
 0x4b2   :  { %1826 = vrcp.f32 %v400_v38 }
 0x4b3   :  { %1828 = vrcp.f32 %v565_v39 }
 0x4b4   :  { %1830 = vrcp.f32 %v730_v37 }
 0x4b5   :  { %1832 = vrcp.f32 %v1078_v36  ;;  %v1243_v45 = vpop.xlane.xlu0 %1242 }
 0x4b6   :  { %1834 = vrcp.f32 %v1243_v45 }
 0x4b7   :  { %1836 = vrcp.f32 %v1408_v52 }
 0x4b9   :  { %v235_v9 = vpop.xlane.xlu0 %234 }
 0x4ba   :  { %1838 = vrcp.f32 %v235_v9 }
 0x4bb   :  { %1840 = vrcp.f32 %v913_v10 }
 0x4bf   :  { %v1827_v40 = vpop.eup %1826 }
 0x4c0   :  { %v1829_v44 = vpop.eup %1828 }
 0x4c1   :  { %v1831_v50 = vpop.eup %1830 }
 0x4c2   :  { %v1833_v60 = vpop.eup %1832 }
 0x4c3   :  { %v1835_v0 = vpop.eup %1834 }
 0x4c4   :  { %v1837_v4 = vpop.eup %1836 }
 0x4c7   :  { %v1839_v11 = vpop.eup %1838 }
 0x4c8   :  { %v313_v14 = vmul.f32 %v1839_v11, %v2078_v51  ;;  %v1841_v19 = vpop.eup %1840  ;;  %v1640_v51 = vld [vmem:[%s2149_s3] ss:$0 sm:$0xff] }
 0x4e7   :  { %v474_v41 = vpop.f32.mrf.mxu1 }
 0x4e8   :  { %v478_v42 = vmul.f32 %v1827_v40, %v474_v41 }
 0x4e9   :  { %v1717_v43 = vpop.f32.mrf.mxu1 }
 0x4ea   :  { %810 = vrot.lane.b32.xlu0 %v478_v42, %s1931_s21 }
 0x4eb   :  { %v639_v46 = vpop.f32.mrf.mxu1 }
 0x4ec   :  { %v643_v6 = vmul.f32 %v1829_v44, %v639_v46 }
 0x4ed   :  { %v1727_v47 = vpop.f32.mrf.mxu1 }
 0x4ee   :  { %814 = vrot.lane.b32.xlu1 %v643_v6, %s1946_s14 }
 0x4ef   :  { %v804_v53 = vpop.f32.mrf.mxu1 }
 0x4f0   :  { %v808_v54 = vmul.f32 %v1831_v50, %v804_v53 }
 0x4f1   :  { %v1737_v55 = vpop.f32.mrf.mxu1 }
 0x4f2   :  { %818 = vrot.lane.b32.xlu1 %v808_v54, %s1947_s15 }
 0x4f3   :  { %v987_v58 = vpop.f32.mrf.mxu1 }
 0x4f4   :  { %v991_v21 = vmul.f32 %v1841_v19, %v987_v58 }
 0x4f5   :  { %v1747_v59 = vpop.f32.mrf.mxu1 }
 0x4f7   :  { %v1152_v61 = vpop.f32.mrf.mxu1 }
 0x4f8   :  { %v1156_v62 = vmul.f32 %v1833_v60, %v1152_v61 }
 0x4f9   :  { %v1757_v63 = vpop.f32.mrf.mxu1 }
 0x4fa   :  { %1488 = vrot.lane.b32.xlu1 %v1156_v62, %s1931_s21 }
 0x4fb   :  { %v1317_v1 = vpop.f32.mrf.mxu1 }
 0x4fc   :  { %v1321_v2 = vmul.f32 %v1835_v0, %v1317_v1 }
 0x4fd   :  { %v1767_v3 = vpop.f32.mrf.mxu1 }
 0x4fe   :  { %1492 = vrot.lane.b32.xlu0 %v1321_v2, %s1946_s14 }
 0x4ff   :  { %v1482_v5 = vpop.f32.mrf.mxu1 }
 0x500   :  { %v1486_v7 = vmul.f32 %v1837_v4, %v1482_v5 }
 0x501   :  { %v1777_v8 = vpop.f32.mrf.mxu1 }
 0x502   :  { %1496 = vrot.lane.b32.xlu1 %v1486_v7, %s1947_s15 }
 0x55c   :  { %v811_v12 = vpop.permute.xlu0 %810 }
 0x55d   :  { %v821_v15 = vsel %vm151_vm2, %v313_v14, %v811_v12 }
 0x560   :  { %v815_v13 = vpop.permute.xlu1 %814 }
 0x561   :  { %v823_v16 = vsel %vm822_vm3, %v821_v15, %v815_v13 }
 0x564   :  { %v819_v17 = vpop.permute.xlu1 %818 }
 0x565   :  { %v825_v18 = vsel %vm824_vm4, %v823_v16, %v819_v17 }
 0x566   :  { %1786 = vmatprep.mubr.msk.f32.mxu0 %vm65_vm0, %v825_v18 }
 0x56c   :  { %v1489_v20 = vpop.permute.xlu1 %1488 }
 0x56d   :  { %v1499_v23 = vsel %vm151_vm2, %v991_v21, %v1489_v20 }
 0x570   :  { %v1493_v22 = vpop.permute.xlu0 %1492 }
 0x571   :  { %v1500_v24 = vsel %vm822_vm3, %v1499_v23, %v1493_v22 }
 0x574   :  { %v1497_v25 = vpop.permute.xlu1 %1496 }
 0x575   :  { %v1501_v26 = vsel %vm824_vm4, %v1500_v24, %v1497_v25 }
 0x576   :  { %1787 = vmatmul.mubr.msk.f32.vlgmr.msra.gmra.mxu0 %vm65_vm0, %v1501_v26 }
 0x636   :  { %v1788_v27 = vpop.f32.mrf.mxu0 }
 0x637   :  { %v1591_v28 = vadd.f32 %v1788_v27, %v1640_v51 }
 0x638   :  { %v1585_v29 = vpop.f32.mrf.mxu0 }
 0x639   :  { %1595 = vst.msk [vmem:[#allocation8 + $0x8] sm:$0xff] %vm65_vm0, %v1591_v28  ;;  %v1586_v30 = vadd.f32 %v1640_v51, %v1585_v29 }
 0x63b   :  { %1594 = vst.msk [vmem:[#allocation8] sm:$0xff] %vm65_vm0, %v1586_v30 }
 0x63c   :  { %1913 = shalt.err (!%p1910_p5)
}
 0x63d   :  { %1607 = dma.vmem_to_hbm [thread:$0]  %s1602_s19, 256, %s2150_s4, [#allocation4], %s1930_s20, %s1930_s20, %s1931_s21  }
 0x63e   :  { %1926 = dma.done.wait [#allocation4], 256  }
 0x63f   :  { %1927 = vsyncadd [#allocation4], 4294967040 }
 0x640   :  { %1611 = vsyncpa [#allocation3], 1 }
 0x641   :  { %1612 = vsyncpa [#allocation6], 1 }
 0x642   :  { %1613 = vsyncpa [#allocation4], 1 }

</bundles_post_ra>
